<compile_context>
chip_gen: v5e
topology: v5e:2x2
jax: 0.10.0
libtpu: 0.0.40
codegen_flags: <defaults>
</compile_context>

<pallas_src>
import functools
import math

import jax
import jax.numpy as jnp
import numpy as np
from jax import lax
from jax.experimental import pallas as pl
from jax.experimental.pallas import tpu as pltpu

BN_MOMENTUM = 0.1
BN_EPS = 1e-5

# Above the 16/32 MiB scoped defaults, comfortably below v7x's 64 MiB physical.
_VMEM_LIMIT = 48 * 1024 * 1024


# ----------------------------------------------------------------------------
# Fused 3x3 conv (pad=1) + BatchNorm(eval) + ReLU  (+ optional fused input add)
# ----------------------------------------------------------------------------
def _conv3x3_kernel(*refs, H, W, fuse_add):
    """refs = (x_ref[, add_ref], w_ref, shift_ref, o_ref, xpad_ref)

      x_ref    : (Cin, H*W)          one image, spatial flattened on lanes
      add_ref  : (Cin, H*W)          optional second operand (node fusion)
      w_ref    : (9, Cout, Cin)      BN-scale-folded weights, tap-major (dy*3+dx)
      shift_ref: (Cout, 1)           folded conv-bias + BN shift
      o_ref    : (Cout, H*W)
      xpad_ref : (Cin, (H+2)*(W+2))  VMEM scratch, zero-padded image
    """
    if fuse_add:
        x_ref, add_ref, w_ref, shift_ref, o_ref, xpad_ref = refs
    else:
        x_ref, w_ref, shift_ref, o_ref, xpad_ref = refs
    Cout = o_ref.shape[0]
    Wp = W + 2
    L = (H - 1) * Wp + W  # flat span covering every valid output pixel

    # Zero the padded scratch every step (cheap VMEM stores; keeps the kernel
    # correct when the "parallel" grid axis is sharded across TensorCores).
    xpad_ref[...] = jnp.zeros(xpad_ref.shape, xpad_ref.dtype)

    xin = x_ref[...]
    if fuse_add:
        xin = xin + add_ref[...]  # fused `layers[i] + layers[i-1]`

    # Scatter the image rows into the interior of the zero-padded scratch.
    for h in range(H):
        xpad_ref[:, pl.ds((h + 1) * Wp + 1, W)] = xin[:, h * W:(h + 1) * W]

    # 3x3 conv == 9 shifted 1x1 convs == 9 lane-dense MXU matmuls.
    acc = jnp.zeros((Cout, L), jnp.float32)
    for k in range(9):
        dy, dx = k // 3, k % 3
        acc = acc + jnp.dot(
            w_ref[k],
            xpad_ref[:, pl.ds(dy * Wp + dx, L)],
            preferred_element_type=jnp.float32,
        )

    # Fused BN shift + ReLU (scale already folded into the weights).
    acc = jnp.maximum(acc + shift_ref[...], 0.0)

    # Extract the W valid columns of each padded row into the output block.
    for h in range(H):
        o_ref[:, pl.ds(h * W, W)] = acc[:, h * Wp:h * Wp + W].astype(o_ref.dtype)


@jax.jit
def conv3x3_bn_relu(x, p, add=None):
    """DeformConv forward (DCN approximated as a dense 3x3 conv) on NCHW input.

    # TODO(synk): DCN's learned offset/modulation branch (data-dependent bilinear
    # gather) has no clean Pallas equivalent; approximated as a dense 3x3 conv.
    """
    N, Cin, H, W = x.shape
    Cout = p["weight"].shape[0]
    HW = H * W

    if add is not None:
        assert add.shape == x.shape, "fused add operand must match the conv input"

    # Fold BN (eval) into the conv: scale into the weight, the rest into a shift.
    scale = p["gamma"] * lax.rsqrt(p["running_var"] + BN_EPS)            # (Cout,)
    w_folded = p["weight"] * scale[:, None, None, None]                  # (Cout,Cin,3,3)
    w_taps = jnp.transpose(w_folded, (2, 3, 0, 1)).reshape(9, Cout, Cin)  # tap-major
    shift = (scale * (p["bias"] - p["running_mean"]) + p["beta"]).reshape(Cout, 1)

    x_flat = x.reshape(N, Cin, HW)  # free reshape, stays NCHW
    row_spec = pl.BlockSpec((None, Cin, HW), lambda n: (n, 0, 0))
    inputs = [x_flat]
    in_specs = [row_spec]
    if add is not None:
        inputs.append(add.reshape(N, Cin, HW))
        in_specs.append(row_spec)
    inputs += [w_taps, shift]
    in_specs += [
        pl.BlockSpec((9, Cout, Cin), lambda n: (0, 0, 0)),
        pl.BlockSpec((Cout, 1), lambda n: (0, 0)),
    ]

    kernel = functools.partial(_conv3x3_kernel, H=H, W=W, fuse_add=add is not None)
    out = pl.pallas_call(
        kernel,
        out_shape=jax.ShapeDtypeStruct((N, Cout, HW), x.dtype),
        grid_spec=pltpu.PrefetchScalarGridSpec(
            num_scalar_prefetch=0,
            grid=(N,),
            in_specs=in_specs,
            out_specs=pl.BlockSpec((None, Cout, HW), lambda n: (n, 0, 0)),
            scratch_shapes=[pltpu.VMEM((Cin, (H + 2) * (W + 2)), jnp.float32)],
        ),
        compiler_params=pltpu.CompilerParams(
            dimension_semantics=("parallel",),
            vmem_limit_bytes=_VMEM_LIMIT,
        ),
    )(*inputs)
    return out.reshape(N, Cout, H, W)


# ----------------------------------------------------------------------------
# Fixed bilinear ConvTranspose2d(o, o, 2f, stride=f, padding=f//2, groups=o)
# ----------------------------------------------------------------------------
def _bilinear_upsample_kernel(x_ref, ah_ref, awt_ref, o_ref):
    # out = A_h @ x @ A_w^T  (separable fixed bilinear kernel, per (n, c) slice)
    t = jnp.dot(x_ref[...], awt_ref[...], preferred_element_type=jnp.float32)
    o_ref[...] = jnp.dot(ah_ref[...], t,
                         preferred_element_type=jnp.float32).astype(o_ref.dtype)


def _bilinear_1d(f):
    """1-D kernel produced by `fill_up_weights` for kernel size 2f."""
    k = 2 * f
    fc = math.ceil(k / 2)
    c = (2 * fc - 1 - fc % 2) / (2.0 * fc)
    return np.array([1.0 - abs(i / fc - c) for i in range(k)], np.float32)


def _upsample_matrix(n_in, f):
    """A[o, i] = w1d[o - f*i + pad] — ConvTranspose1d with the bilinear kernel."""
    k = 2 * f
    pad = f // 2
    w1d = _bilinear_1d(f)
    n_out = (n_in - 1) * f - 2 * pad + k
    a = np.zeros((n_out, n_in), np.float32)
    for o in range(n_out):
        for i in range(n_in):
            t = o - f * i + pad
            if 0 <= t < k:
                a[o, i] = w1d[t]
    return a


@functools.partial(jax.jit, static_argnames=("f",))
def bilinear_upsample(x, f):
    N, C, Hin, Win = x.shape
    a_h = jnp.asarray(_upsample_matrix(Hin, f))        # (Hout, Hin)
    a_wt = jnp.asarray(_upsample_matrix(Win, f).T)     # (Win, Wout)
    Hout, Wout = a_h.shape[0], a_wt.shape[1]

    x_nc = x.reshape(N * C, Hin, Win)  # free reshape
    out = pl.pallas_call(
        _bilinear_upsample_kernel,
        out_shape=jax.ShapeDtypeStruct((N * C, Hout, Wout), x.dtype),
        grid_spec=pltpu.PrefetchScalarGridSpec(
            num_scalar_prefetch=0,
            grid=(N * C,),
            in_specs=[
                pl.BlockSpec((None, Hin, Win), lambda i: (i, 0, 0)),
                pl.BlockSpec((Hout, Hin), lambda i: (0, 0)),
                pl.BlockSpec((Win, Wout), lambda i: (0, 0)),
            ],
            out_specs=pl.BlockSpec((None, Hout, Wout), lambda i: (i, 0, 0)),
        ),
        compiler_params=pltpu.CompilerParams(
            dimension_semantics=("parallel",),
            vmem_limit_bytes=_VMEM_LIMIT,
        ),
    )(x_nc, a_h, a_wt)
    return out.reshape(N, C, Hout, Wout)


# ----------------------------------------------------------------------------
# Module construction + forward (mirrors DLAUp / IDAUp / DeformConv)
# ----------------------------------------------------------------------------
def make_deform_conv_params(key, chi, cho):
    kw, kb, kg, kbe, km, kv = jax.random.split(key, 6)
    return {
        "weight": jax.random.normal(kw, (cho, chi, 3, 3), jnp.float32) / np.sqrt(9.0 * chi),
        "bias": 0.05 * jax.random.normal(kb, (cho,), jnp.float32),
        "gamma": 1.0 + 0.1 * jax.random.normal(kg, (cho,), jnp.float32),
        "beta": 0.1 * jax.random.normal(kbe, (cho,), jnp.float32),
        "running_mean": 0.1 * jax.random.normal(km, (cho,), jnp.float32),
        "running_var": jnp.abs(jax.random.normal(kv, (cho,), jnp.float32)) + 0.5,
    }


def make_ida_up_params(key, o, channels, up_f):
    nodes = []
    for i in range(1, len(channels)):
        key, kp, kn = jax.random.split(key, 3)
        nodes.append({
            "f": int(up_f[i]),
            "proj": make_deform_conv_params(kp, int(channels[i]), o),
            "node": make_deform_conv_params(kn, o, o),
        })
    return {"nodes": nodes}


def make_dla_up_params(key, startp, channels, scales, in_channels=None):
    if in_channels is None:
        in_channels = list(channels)
    channels = list(channels)
    in_channels = list(in_channels)
    scales = np.array(scales, dtype=int)
    params = {"startp": startp}
    for i in range(len(channels) - 1):
        j = -i - 2
        key, sub = jax.random.split(key)
        params["ida_{}".format(i)] = make_ida_up_params(
            sub, channels[j], in_channels[j:], list(scales[j:] // scales[j]))
        scales[j + 1:] = scales[j]
        in_channels[j + 1:] = [channels[j] for _ in channels[j + 1:]]
    return params


def ida_up_forward(ida_params, layers, startp, endp, conv_fn, up_fn):
    for i in range(startp + 1, endp):
        node_p = ida_params["nodes"][i - startp - 1]
        y = conv_fn(layers[i], node_p["proj"])                 # proj (DeformConv)
        y = up_fn(y, node_p["f"])                              # fixed bilinear up
        layers[i] = conv_fn(y, node_p["node"], layers[i - 1])  # node, add fused


def dla_up_forward(params, layers, conv_fn=conv3x3_bn_relu, up_fn=bilinear_upsample):
    layers = list(layers)
    startp = params["startp"]
    out = [layers[-1]]
    for i in range(len(layers) - startp - 1):
        ida_up_forward(params["ida_{}".format(i)], layers,
                       len(layers) - i - 2, len(layers), conv_fn, up_fn)
        out.insert(0, layers[-1])
    return out


# ----------------------------------------------------------------------------
# Pure-JAX reference (independent math path) for validation
# ----------------------------------------------------------------------------
def conv3x3_bn_relu_ref(x, p, add=None):
    if add is not None:
        x = x + add
    y = lax.conv_general_dilated(
        x, p["weight"], window_strides=(1, 1), padding=((1, 1), (1, 1)),
        dimension_numbers=("NCHW", "OIHW", "NCHW"),
        precision=lax.Precision.HIGHEST)
    y = y + p["bias"][None, :, None, None]
    scale = p["gamma"] / jnp.sqrt(p["running_var"] + BN_EPS)
    shift = p["beta"] - p["running_mean"] * scale
    y = y * scale[None, :, None, None] + shift[None, :, None, None]
    return jnp.maximum(y, 0.0)


def bilinear_upsample_ref(x, f):
    # ConvTranspose2d(groups=C) == lhs-dilated conv with the spatially-flipped kernel.
    N, C, Hin, Win = x.shape
    k = 2 * f
    pad = f // 2
    w1d = _bilinear_1d(f)
    w2d = np.ascontiguousarray(np.outer(w1d, w1d)[::-1, ::-1])
    w = jnp.asarray(np.tile(w2d[None, None], (C, 1, 1, 1)))  # (C, 1, k, k)
    return lax.conv_general_dilated(
        x, w, window_strides=(1, 1),
        padding=((k - 1 - pad, k - 1 - pad), (k - 1 - pad, k - 1 - pad)),
        lhs_dilation=(f, f), dimension_numbers=("NCHW", "OIHW", "NCHW"),
        feature_group_count=C, precision=lax.Precision.HIGHEST)


# ----------------------------------------------------------------------------
if __name__ == "__main__":
    key = jax.random.PRNGKey(0)
    kp, k0, k1, k2 = jax.random.split(key, 4)

    # Small DLA-style pyramid: channels (4, 8, 16), strides (1, 2, 4), batch 2.
    startp = 0
    channels = (4, 8, 16)
    scales = (1, 2, 4)
    N, S = 2, 16
    layers = [
        jax.random.normal(k0, (N, channels[0], S, S), jnp.float32),
        jax.random.normal(k1, (N, channels[1], S // 2, S // 2), jnp.float32),
        jax.random.normal(k2, (N, channels[2], S // 4, S // 4), jnp.float32),
    ]
    params = make_dla_up_params(kp, startp, channels, scales)

    outs = dla_up_forward(params, layers)
    outs = jax.block_until_ready(outs)

    refs = dla_up_forward(params, layers,
                          conv_fn=conv3x3_bn_relu_ref, up_fn=bilinear_upsample_ref)
    for o, r in zip(outs, refs):
        np.testing.assert_allclose(np.asarray(o), np.asarray(r), rtol=1e-3, atol=1e-3)

    print("KERNEL_OK")
</pallas_src>

<mosaic_0001>
module attributes {stable_mosaic.version = 11 : i64} {
  func.func @_conv3x3_kernel(%arg0: i32, %arg1: memref<1x16x16xf32, #tpu.memory_space<vmem>>, %arg2: memref<9x8x16xf32, #tpu.memory_space<vmem>>, %arg3: memref<8x1xf32, #tpu.memory_space<vmem>>, %arg4: memref<1x8x16xf32, #tpu.memory_space<vmem>>, %arg5: memref<16x36xf32, #tpu.memory_space<vmem>>) attributes {dimension_semantics = [#tpu.dimension_semantics<parallel>], iteration_bounds = array<i64: 2>, scalar_prefetch = 0 : i64, scratch_operands = 1 : i64, tpu.core_type = #tpu.core_type<tc>, window_params = [{transform_indices = @transform_0, window_bounds = array<i64: 1, 16, 16>}, {pipeline_mode = #tpu.pipeline_mode<synchronous>, transform_indices = @transform_1, window_bounds = array<i64: 9, 8, 16>}, {pipeline_mode = #tpu.pipeline_mode<synchronous>, transform_indices = @transform_2, window_bounds = array<i64: 8, 1>}, {transform_indices = @transform_3, window_bounds = array<i64: 1, 8, 16>}]} {
    %cst = arith.constant 0.000000e+00 : f32
    %0 = vector.broadcast %cst : f32 to vector<16x36xf32>
    %c0 = arith.constant 0 : index
    %c0_0 = arith.constant 0 : index
    %1 = vector.load %arg5[%c0, %c0_0] : memref<16x36xf32, #tpu.memory_space<vmem>>, vector<16x36xf32>
    tpu.vector_store %arg5[%c0, %c0_0], %0 {strides = array<i32>} : memref<16x36xf32, #tpu.memory_space<vmem>>, vector<16x36xf32>,
    %c0_1 = arith.constant 0 : index
    %c0_2 = arith.constant 0 : index
    %c0_3 = arith.constant 0 : index
    %2 = vector.load %arg1[%c0_1, %c0_2, %c0_3] : memref<1x16x16xf32, #tpu.memory_space<vmem>>, vector<1x16x16xf32>
    %3 = vector.shape_cast %2 : vector<1x16x16xf32> to vector<16x16xf32>
    %4 = vector.extract_strided_slice %3 {offsets = [0, 0], sizes = [16, 4], strides = [1, 1]} : vector<16x16xf32> to vector<16x4xf32>
    %c0_4 = arith.constant 0 : index
    %c7 = arith.constant 7 : index
    %5 = vector.load %arg5[%c0_4, %c7] : memref<16x36xf32, #tpu.memory_space<vmem>>, vector<16x4xf32>
    tpu.vector_store %arg5[%c0_4, %c7], %4 {strides = array<i32>} : memref<16x36xf32, #tpu.memory_space<vmem>>, vector<16x4xf32>,
    %6 = vector.extract_strided_slice %3 {offsets = [0, 4], sizes = [16, 4], strides = [1, 1]} : vector<16x16xf32> to vector<16x4xf32>
    %c0_5 = arith.constant 0 : index
    %c13 = arith.constant 13 : index
    %7 = vector.load %arg5[%c0_5, %c13] : memref<16x36xf32, #tpu.memory_space<vmem>>, vector<16x4xf32>
    tpu.vector_store %arg5[%c0_5, %c13], %6 {strides = array<i32>} : memref<16x36xf32, #tpu.memory_space<vmem>>, vector<16x4xf32>,
    %8 = vector.extract_strided_slice %3 {offsets = [0, 8], sizes = [16, 4], strides = [1, 1]} : vector<16x16xf32> to vector<16x4xf32>
    %c0_6 = arith.constant 0 : index
    %c19 = arith.constant 19 : index
    %9 = vector.load %arg5[%c0_6, %c19] : memref<16x36xf32, #tpu.memory_space<vmem>>, vector<16x4xf32>
    tpu.vector_store %arg5[%c0_6, %c19], %8 {strides = array<i32>} : memref<16x36xf32, #tpu.memory_space<vmem>>, vector<16x4xf32>,
    %10 = vector.extract_strided_slice %3 {offsets = [0, 12], sizes = [16, 4], strides = [1, 1]} : vector<16x16xf32> to vector<16x4xf32>
    %c0_7 = arith.constant 0 : index
    %c25 = arith.constant 25 : index
    %11 = vector.load %arg5[%c0_7, %c25] : memref<16x36xf32, #tpu.memory_space<vmem>>, vector<16x4xf32>
    tpu.vector_store %arg5[%c0_7, %c25], %10 {strides = array<i32>} : memref<16x36xf32, #tpu.memory_space<vmem>>, vector<16x4xf32>,
    %cst_8 = arith.constant 0.000000e+00 : f32
    %12 = vector.broadcast %cst_8 : f32 to vector<8x22xf32>
    %c0_9 = arith.constant 0 : index
    %c0_10 = arith.constant 0 : index
    %c0_11 = arith.constant 0 : index
    %13 = vector.load %arg2[%c0_9, %c0_10, %c0_11] : memref<9x8x16xf32, #tpu.memory_space<vmem>>, vector<1x8x16xf32>
    %14 = vector.shape_cast %13 : vector<1x8x16xf32> to vector<8x16xf32>
    %c0_12 = arith.constant 0 : index
    %c0_13 = arith.constant 0 : index
    %15 = vector.load %arg5[%c0_12, %c0_13] : memref<16x36xf32, #tpu.memory_space<vmem>>, vector<16x22xf32>
    %cst_14 = arith.constant dense<0.000000e+00> : vector<8x22xf32>
    %16 = tpu.matmul %14, %15, %cst_14 {dimension_numbers = #tpu.dot_dimension_numbers<[1], [0], [0], [1], [0, 0, 1, 1], [], []>} : vector<8x16xf32>, vector<16x22xf32>, vector<8x22xf32> -> vector<8x22xf32>
    %17 = arith.addf %12, %16 : vector<8x22xf32>
    %c1 = arith.constant 1 : index
    %c0_15 = arith.constant 0 : index
    %c0_16 = arith.constant 0 : index
    %18 = vector.load %arg2[%c1, %c0_15, %c0_16] : memref<9x8x16xf32, #tpu.memory_space<vmem>>, vector<1x8x16xf32>
    %19 = vector.shape_cast %18 : vector<1x8x16xf32> to vector<8x16xf32>
    %c0_17 = arith.constant 0 : index
    %c1_18 = arith.constant 1 : index
    %20 = vector.load %arg5[%c0_17, %c1_18] : memref<16x36xf32, #tpu.memory_space<vmem>>, vector<16x22xf32>
    %cst_19 = arith.constant dense<0.000000e+00> : vector<8x22xf32>
    %21 = tpu.matmul %19, %20, %cst_19 {dimension_numbers = #tpu.dot_dimension_numbers<[1], [0], [0], [1], [0, 0, 1, 1], [], []>} : vector<8x16xf32>, vector<16x22xf32>, vector<8x22xf32> -> vector<8x22xf32>
    %22 = arith.addf %17, %21 : vector<8x22xf32>
    %c2 = arith.constant 2 : index
    %c0_20 = arith.constant 0 : index
    %c0_21 = arith.constant 0 : index
    %23 = vector.load %arg2[%c2, %c0_20, %c0_21] : memref<9x8x16xf32, #tpu.memory_space<vmem>>, vector<1x8x16xf32>
    %24 = vector.shape_cast %23 : vector<1x8x16xf32> to vector<8x16xf32>
    %c0_22 = arith.constant 0 : index
    %c2_23 = arith.constant 2 : index
    %25 = vector.load %arg5[%c0_22, %c2_23] : memref<16x36xf32, #tpu.memory_space<vmem>>, vector<16x22xf32>
    %cst_24 = arith.constant dense<0.000000e+00> : vector<8x22xf32>
    %26 = tpu.matmul %24, %25, %cst_24 {dimension_numbers = #tpu.dot_dimension_numbers<[1], [0], [0], [1], [0, 0, 1, 1], [], []>} : vector<8x16xf32>, vector<16x22xf32>, vector<8x22xf32> -> vector<8x22xf32>
    %27 = arith.addf %22, %26 : vector<8x22xf32>
    %c3 = arith.constant 3 : index
    %c0_25 = arith.constant 0 : index
    %c0_26 = arith.constant 0 : index
    %28 = vector.load %arg2[%c3, %c0_25, %c0_26] : memref<9x8x16xf32, #tpu.memory_space<vmem>>, vector<1x8x16xf32>
    %29 = vector.shape_cast %28 : vector<1x8x16xf32> to vector<8x16xf32>
    %c0_27 = arith.constant 0 : index
    %c6 = arith.constant 6 : index
    %30 = vector.load %arg5[%c0_27, %c6] : memref<16x36xf32, #tpu.memory_space<vmem>>, vector<16x22xf32>
    %cst_28 = arith.constant dense<0.000000e+00> : vector<8x22xf32>
    %31 = tpu.matmul %29, %30, %cst_28 {dimension_numbers = #tpu.dot_dimension_numbers<[1], [0], [0], [1], [0, 0, 1, 1], [], []>} : vector<8x16xf32>, vector<16x22xf32>, vector<8x22xf32> -> vector<8x22xf32>
    %32 = arith.addf %27, %31 : vector<8x22xf32>
    %c4 = arith.constant 4 : index
    %c0_29 = arith.constant 0 : index
    %c0_30 = arith.constant 0 : index
    %33 = vector.load %arg2[%c4, %c0_29, %c0_30] : memref<9x8x16xf32, #tpu.memory_space<vmem>>, vector<1x8x16xf32>
    %34 = vector.shape_cast %33 : vector<1x8x16xf32> to vector<8x16xf32>
    %c0_31 = arith.constant 0 : index
    %c7_32 = arith.constant 7 : index
    %35 = vector.load %arg5[%c0_31, %c7_32] : memref<16x36xf32, #tpu.memory_space<vmem>>, vector<16x22xf32>
    %cst_33 = arith.constant dense<0.000000e+00> : vector<8x22xf32>
    %36 = tpu.matmul %34, %35, %cst_33 {dimension_numbers = #tpu.dot_dimension_numbers<[1], [0], [0], [1], [0, 0, 1, 1], [], []>} : vector<8x16xf32>, vector<16x22xf32>, vector<8x22xf32> -> vector<8x22xf32>
    %37 = arith.addf %32, %36 : vector<8x22xf32>
    %c5 = arith.constant 5 : index
    %c0_34 = arith.constant 0 : index
    %c0_35 = arith.constant 0 : index
    %38 = vector.load %arg2[%c5, %c0_34, %c0_35] : memref<9x8x16xf32, #tpu.memory_space<vmem>>, vector<1x8x16xf32>
    %39 = vector.shape_cast %38 : vector<1x8x16xf32> to vector<8x16xf32>
    %c0_36 = arith.constant 0 : index
    %c8 = arith.constant 8 : index
    %40 = vector.load %arg5[%c0_36, %c8] : memref<16x36xf32, #tpu.memory_space<vmem>>, vector<16x22xf32>
    %cst_37 = arith.constant dense<0.000000e+00> : vector<8x22xf32>
    %41 = tpu.matmul %39, %40, %cst_37 {dimension_numbers = #tpu.dot_dimension_numbers<[1], [0], [0], [1], [0, 0, 1, 1], [], []>} : vector<8x16xf32>, vector<16x22xf32>, vector<8x22xf32> -> vector<8x22xf32>
    %42 = arith.addf %37, %41 : vector<8x22xf32>
    %c6_38 = arith.constant 6 : index
    %c0_39 = arith.constant 0 : index
    %c0_40 = arith.constant 0 : index
    %43 = vector.load %arg2[%c6_38, %c0_39, %c0_40] : memref<9x8x16xf32, #tpu.memory_space<vmem>>, vector<1x8x16xf32>
    %44 = vector.shape_cast %43 : vector<1x8x16xf32> to vector<8x16xf32>
    %c0_41 = arith.constant 0 : index
    %c12 = arith.constant 12 : index
    %45 = vector.load %arg5[%c0_41, %c12] : memref<16x36xf32, #tpu.memory_space<vmem>>, vector<16x22xf32>
    %cst_42 = arith.constant dense<0.000000e+00> : vector<8x22xf32>
    %46 = tpu.matmul %44, %45, %cst_42 {dimension_numbers = #tpu.dot_dimension_numbers<[1], [0], [0], [1], [0, 0, 1, 1], [], []>} : vector<8x16xf32>, vector<16x22xf32>, vector<8x22xf32> -> vector<8x22xf32>
    %47 = arith.addf %42, %46 : vector<8x22xf32>
    %c7_43 = arith.constant 7 : index
    %c0_44 = arith.constant 0 : index
    %c0_45 = arith.constant 0 : index
    %48 = vector.load %arg2[%c7_43, %c0_44, %c0_45] : memref<9x8x16xf32, #tpu.memory_space<vmem>>, vector<1x8x16xf32>
    %49 = vector.shape_cast %48 : vector<1x8x16xf32> to vector<8x16xf32>
    %c0_46 = arith.constant 0 : index
    %c13_47 = arith.constant 13 : index
    %50 = vector.load %arg5[%c0_46, %c13_47] : memref<16x36xf32, #tpu.memory_space<vmem>>, vector<16x22xf32>
    %cst_48 = arith.constant dense<0.000000e+00> : vector<8x22xf32>
    %51 = tpu.matmul %49, %50, %cst_48 {dimension_numbers = #tpu.dot_dimension_numbers<[1], [0], [0], [1], [0, 0, 1, 1], [], []>} : vector<8x16xf32>, vector<16x22xf32>, vector<8x22xf32> -> vector<8x22xf32>
    %52 = arith.addf %47, %51 : vector<8x22xf32>
    %c8_49 = arith.constant 8 : index
    %c0_50 = arith.constant 0 : index
    %c0_51 = arith.constant 0 : index
    %53 = vector.load %arg2[%c8_49, %c0_50, %c0_51] : memref<9x8x16xf32, #tpu.memory_space<vmem>>, vector<1x8x16xf32>
    %54 = vector.shape_cast %53 : vector<1x8x16xf32> to vector<8x16xf32>
    %c0_52 = arith.constant 0 : index
    %c14 = arith.constant 14 : index
    %55 = vector.load %arg5[%c0_52, %c14] : memref<16x36xf32, #tpu.memory_space<vmem>>, vector<16x22xf32>
    %cst_53 = arith.constant dense<0.000000e+00> : vector<8x22xf32>
    %56 = tpu.matmul %54, %55, %cst_53 {dimension_numbers = #tpu.dot_dimension_numbers<[1], [0], [0], [1], [0, 0, 1, 1], [], []>} : vector<8x16xf32>, vector<16x22xf32>, vector<8x22xf32> -> vector<8x22xf32>
    %57 = arith.addf %52, %56 : vector<8x22xf32>
    %c0_54 = arith.constant 0 : index
    %c0_55 = arith.constant 0 : index
    %58 = vector.load %arg3[%c0_54, %c0_55] : memref<8x1xf32, #tpu.memory_space<vmem>>, vector<8x1xf32>
    %59 = vector.broadcast %58 : vector<8x1xf32> to vector<8x22xf32>
    %60 = arith.addf %57, %59 : vector<8x22xf32>
    %cst_56 = arith.constant 0.000000e+00 : f32
    %61 = vector.broadcast %cst_56 : f32 to vector<8x22xf32>
    %62 = arith.maximumf %60, %61 : vector<8x22xf32>
    %63 = vector.extract_strided_slice %62 {offsets = [0, 0], sizes = [8, 4], strides = [1, 1]} : vector<8x22xf32> to vector<8x4xf32>
    %c0_57 = arith.constant 0 : index
    %c0_58 = arith.constant 0 : index
    %c0_59 = arith.constant 0 : index
    %64 = vector.load %arg4[%c0_57, %c0_58, %c0_59] : memref<1x8x16xf32, #tpu.memory_space<vmem>>, vector<1x8x4xf32>
    %65 = vector.shape_cast %64 : vector<1x8x4xf32> to vector<8x4xf32>
    %66 = vector.shape_cast %63 : vector<8x4xf32> to vector<1x8x4xf32>
    tpu.vector_store %arg4[%c0_57, %c0_58, %c0_59], %66 {strides = array<i32>} : memref<1x8x16xf32, #tpu.memory_space<vmem>>, vector<1x8x4xf32>,
    %67 = vector.extract_strided_slice %62 {offsets = [0, 6], sizes = [8, 4], strides = [1, 1]} : vector<8x22xf32> to vector<8x4xf32>
    %c0_60 = arith.constant 0 : index
    %c0_61 = arith.constant 0 : index
    %c4_62 = arith.constant 4 : index
    %68 = vector.load %arg4[%c0_60, %c0_61, %c4_62] : memref<1x8x16xf32, #tpu.memory_space<vmem>>, vector<1x8x4xf32>
    %69 = vector.shape_cast %68 : vector<1x8x4xf32> to vector<8x4xf32>
    %70 = vector.shape_cast %67 : vector<8x4xf32> to vector<1x8x4xf32>
    tpu.vector_store %arg4[%c0_60, %c0_61, %c4_62], %70 {strides = array<i32>} : memref<1x8x16xf32, #tpu.memory_space<vmem>>, vector<1x8x4xf32>,
    %71 = vector.extract_strided_slice %62 {offsets = [0, 12], sizes = [8, 4], strides = [1, 1]} : vector<8x22xf32> to vector<8x4xf32>
    %c0_63 = arith.constant 0 : index
    %c0_64 = arith.constant 0 : index
    %c8_65 = arith.constant 8 : index
    %72 = vector.load %arg4[%c0_63, %c0_64, %c8_65] : memref<1x8x16xf32, #tpu.memory_space<vmem>>, vector<1x8x4xf32>
    %73 = vector.shape_cast %72 : vector<1x8x4xf32> to vector<8x4xf32>
    %74 = vector.shape_cast %71 : vector<8x4xf32> to vector<1x8x4xf32>
    tpu.vector_store %arg4[%c0_63, %c0_64, %c8_65], %74 {strides = array<i32>} : memref<1x8x16xf32, #tpu.memory_space<vmem>>, vector<1x8x4xf32>,
    %75 = vector.extract_strided_slice %62 {offsets = [0, 18], sizes = [8, 4], strides = [1, 1]} : vector<8x22xf32> to vector<8x4xf32>
    %c0_66 = arith.constant 0 : index
    %c0_67 = arith.constant 0 : index
    %c12_68 = arith.constant 12 : index
    %76 = vector.load %arg4[%c0_66, %c0_67, %c12_68] : memref<1x8x16xf32, #tpu.memory_space<vmem>>, vector<1x8x4xf32>
    %77 = vector.shape_cast %76 : vector<1x8x4xf32> to vector<8x4xf32>
    %78 = vector.shape_cast %75 : vector<8x4xf32> to vector<1x8x4xf32>
    tpu.vector_store %arg4[%c0_66, %c0_67, %c12_68], %78 {strides = array<i32>} : memref<1x8x16xf32, #tpu.memory_space<vmem>>, vector<1x8x4xf32>,
    return
  }
  func.func @transform_0(%arg0: i32) -> (i32, i32, i32) {
    %c0_i32 = arith.constant 0 : i32
    %c0_i32_0 = arith.constant 0 : i32
    %c0_i32_1 = arith.constant 0 : i32
    return %arg0, %c0_i32, %c0_i32_0 : i32, i32, i32
  }
  func.func @transform_1(%arg0: i32) -> (i32, i32, i32) {
    %c0_i32 = arith.constant 0 : i32
    %c0_i32_0 = arith.constant 0 : i32
    %c0_i32_1 = arith.constant 0 : i32
    %c0_i32_2 = arith.constant 0 : i32
    return %c0_i32, %c0_i32_0, %c0_i32_1 : i32, i32, i32
  }
  func.func @transform_2(%arg0: i32) -> (i32, i32) {
    %c0_i32 = arith.constant 0 : i32
    %c0_i32_0 = arith.constant 0 : i32
    %c0_i32_1 = arith.constant 0 : i32
    return %c0_i32, %c0_i32_0 : i32, i32
  }
  func.func @transform_3(%arg0: i32) -> (i32, i32, i32) {
    %c0_i32 = arith.constant 0 : i32
    %c0_i32_0 = arith.constant 0 : i32
    %c0_i32_1 = arith.constant 0 : i32
    return %arg0, %c0_i32, %c0_i32_0 : i32, i32, i32
  }
}

</mosaic_0001>

<bundles_post_ra>
// kernel: conv3x3_bn_relu.1
= control target key start
LH: loop header
LB: loop body
LE: loop exit
PB: predicated region body
PF: predicated region fallthrough
CT: control target
= control target key end

     0   :  { %s711_s12 = smov 0   ;;  %s775_s0 = inlined_call_operand.vmem [shape: f32[2,16,16], index: 0, kind: input, shape index: {}]   ;;  %s776_s1 = inlined_call_operand.vmem [shape: f32[9,8,16], index: 1, kind: input, shape index: {}]   ;;  %s777_s2 = inlined_call_operand.vmem [shape: f32[8,1], index: 2, kind: input, shape index: {}]   ;;  %s778_s3 = inlined_call_operand.vmem [shape: f32[2,8,16], index: 3, kind: output, shape index: {}]  }
   0x1 LB: > { %s575_s13 = sadd.s32 4294967295, %s674_s12   ;;  %p579_p0 = scmp.ge.s32.totalorder %s674_s12, 1  ;;  %s674_s12 = sphi %s711_s12, %s13_s12  }
   0x2   : > { %p137_p1 = scmp.lt.s32.totalorder %s674_s12, 3 }
   0x4   : > { %p138_p2 = pnand %p579_p0, %p137_p1 }
   0x5   : > { %p160_p3 = scmp.lt.s32.totalorder (!%p138_p2), %s575_s13, 1  ;;  %s677_s18 = smov (!%p138_p2), 7  }
   0x6   : > { %141 = sbr.rel (%p138_p2) target bundleno = 542 (0x21e), region = 32  ;;  %s678_s19 = smov (!%p138_p2), 9  }
   0x7   : > { %s679_s20 = smov (!%p138_p2), 11   ;;  %s680_s21 = smov (!%p138_p2), 13  }
   0x8   : > { %s681_s22 = smov (!%p138_p2), 122   ;;  %s682_s23 = smov (!%p138_p2), 127  }
   0x9   : > { %s683_s24 = smov (!%p138_p2), 126   ;;  %s684_s25 = smov (!%p138_p2), 115  }
   0xa   : > { %s685_s26 = smov (!%p138_p2), 121   ;;  %s686_s27 = smov (!%p138_p2), 116  }
   0xb   : > { %vm169_vm0 = vcmask 293888   ;;  %v676_v0 = vmov 0.0   ;;  %s780_s13 = smov (!%p160_p3, %s575_s13), 1  ;;  %vm182_vm1 = vcmask 89144   ;;  %vm191_vm2 = vcmask 138344   ;;  %s687_s28 = smov 114  }
   0xc   : > { %171 = vst.msk [vmem:[#allocation2 + $0x8] sm:$0xff] %vm169_vm0, %v676_v0  ;;  %s602_s14 = sshll.u32 %s780_s13, 4  ;;  %vm200_vm3 = vcmask 187544   ;;  %vm209_vm4 = vcmask 236744   ;;  %s688_s29 = smov 120   ;;  %vm225_vm5 = vcmask 130048  }
   0xd   : > { %170 = vst.msk [vmem:[#allocation2] sm:$0xff] %vm169_vm0, %v676_v0  ;;  %s164_s17 = scalar_lea.vmem %s775_s0, %s602_s14  ;;  %v212_v14 = vld [vmem:[%s776_s1] sm:$0xff]  ;;  %v586_v18 = vld [vmem:[%s776_s1 + $0x10] sm:$0xff]  ;;  %v689_v24 = vmov 0   ;;  %v592_v28 = vld [vmem:[%s776_s1 + $0x28] sm:$0xff]  ;;  %vm504_vm6 = vcmask 31744  }
   0xe   : > { %v173_v1 = vld [vmem:[%s164_s17 + $0x8] sm:$0xff]  ;;  %v172_v2 = vld [vmem:[%s164_s17] sm:$0xff]  ;;  %v594_v22 = vld [vmem:[%s776_s1 + $0x30] sm:$0xff]  ;;  %666 = vset.pattern.permute.xlu1 %v689_v24  ;;  %667 = vset.pattern.permute.xlu0 %v689_v24  ;;  %s690_s4 = smov 124   ;;  %vm510_vm7 = vcmask 64544   ;;  %vm515_vm8 = vcmask 97344  }
   0xf   : > { %178 = vrot.lane.b32.xlu0 %v173_v1, %s677_s18  ;;  %176 = vrot.lane.b32.xlu1 %v172_v2, %s677_s18  ;;  %v496_v23 = vld [vmem:[%s777_s2] sm:$0xff]  ;;  %v588_v35 = vld [vmem:[%s776_s1 + $0x18] sm:$0xff]  ;;  %vm520_vm9 = vcmask 130144  }
  0x10   : > { %185 = vrot.lane.b32.xlu2 %v172_v2, %s678_s19  ;;  %v583_v36 = vld [vmem:[%s776_s1 + $0x8] sm:$0xff]  ;;  %v596_v43 = vld [vmem:[%s776_s1 + $0x38] sm:$0xff]  ;;  %v590_v44 = vld [vmem:[%s776_s1 + $0x20] sm:$0xff] }
  0x11   : > { %v598_v48 = vld [vmem:[%s776_s1 + $0x40] sm:$0xff] }
  0x17   : > { %187 = vrot.lane.b32.xlu0 %v173_v1, %s678_s19  ;;  %196 = vrot.lane.b32.xlu1 %v173_v1, %s679_s20 }
  0x18   : > { %205 = vrot.lane.b32.xlu2 %v173_v1, %s680_s21 }
  0x1f   : > { %194 = vrot.lane.b32.xlu0 %v172_v2, %s679_s20  ;;  %203 = vrot.lane.b32.xlu1 %v172_v2, %s680_s21 }
  0x6a   : > { %v186_v3 = vpop.permute.xlu2 %185 }
  0x72   : > { %v206_v6 = vpop.permute.xlu2 %205 }
  0x81   : > { %v179_v4 = vpop.permute.xlu0 %178  ;;  %v177_v5 = vpop.permute.xlu1 %176 }
  0x82   : > { %184 = vst.msk [vmem:[#allocation2 + $0x8] sm:$0xff] %vm182_vm1, %v179_v4 }
  0x83   : > { %183 = vst.msk [vmem:[#allocation2] sm:$0xff] %vm182_vm1, %v177_v5 }
  0x84   : > { %192 = vst.msk [vmem:[#allocation2] sm:$0xff] %vm191_vm2, %v186_v3 }
  0x89   : > { %v188_v7 = vpop.permute.xlu0 %187  ;;  %v197_v8 = vpop.permute.xlu1 %196 }
  0x8a   : > { %193 = vst.msk [vmem:[#allocation2 + $0x8] sm:$0xff] %vm191_vm2, %v188_v7 }
  0x8b   : > { %202 = vst.msk [vmem:[#allocation2 + $0x8] sm:$0xff] %vm200_vm3, %v197_v8 }
  0x8c   : > { %211 = vst.msk [vmem:[#allocation2 + $0x8] sm:$0xff] %vm209_vm4, %v206_v6 }
  0x91   : > { %v195_v9 = vpop.permute.xlu0 %194  ;;  %v204_v10 = vpop.permute.xlu1 %203 }
  0x92   : > { %201 = vst.msk [vmem:[#allocation2] sm:$0xff] %vm200_vm3, %v195_v9 }
  0x93   : > { %210 = vst.msk [vmem:[#allocation2] sm:$0xff] %vm209_vm4, %v204_v10  ;;  %v214_v11 = vld [vmem:[#allocation2 + $0x8] sm:$0xff] }
  0x94   : > { %266 = vmatpush.msra.mxu1 %v214_v11 }
  0x9a   : > { %v213_v12 = vld [vmem:[#allocation2] sm:$0xff] }
  0x9b   : > { %267 = vmatpush.msra.mxu1 %v213_v12  ;;  %v636_v13 = vpack.i.bf16 %v213_v12, %v214_v11 }
  0x9c   : > { %585 = vmatmul.msk.f32.vlgmr.msra.gmra.mxu1 %vm225_vm5, %v212_v14 }
  0x9d   : > { %637 = vrot.lane.b32.xlu1 %v636_v13, %s681_s22  ;;  %632 = vrot.lane.b32.xlu0 %v636_v13, %s682_s23 }
  0x9e   : > { %627 = vrot.lane.b32.xlu2 %v636_v13, %s683_s24 }
  0xa5   : > { %652 = vrot.lane.b32.xlu1 %v636_v13, %s684_s25  ;;  %647 = vrot.lane.b32.xlu0 %v636_v13, %s685_s26 }
  0xa6   : > { %642 = vrot.lane.b32.xlu2 %v636_v13, %s686_s27  ;;  %s582_s27 = sshll.u32 %s780_s13, 3 }
  0xa7   : > { %s168_s30 = scalar_lea.vmem %s778_s3, %s582_s27 }
  0xad   : > { %662 = vrot.lane.b32.xlu0 %v636_v13, %s687_s28  ;;  %499 = vperm.xlu1 %666, %v496_v23  }
  0xae   : > { %657 = vrot.lane.b32.xlu2 %v636_v13, %s688_s29 }
  0xf8   : > { %v628_v15 = vpop.permute.xlu2 %627 }
  0xf9   : > { %v629_v16 = vunpack.i.l.bf16 %v628_v15  ;;  %v630_v17 = vunpack.i.h.bf16 %v628_v15 }
  0xfb   : > { %297 = vmatpush.msra.mxu2 %v629_v16 }
  0xfd   : > { %298 = vmatpush.msra.mxu2 %v630_v17 }
  0xfe   : > { %587 = vmatmul.msk.f32.vlgmr.msra.gmra.mxu2 %vm225_vm5, %v586_v18 }
 0x100   : > { %v643_v19 = vpop.permute.xlu2 %642 }
 0x101   : > { %v644_v20 = vunpack.i.l.bf16 %v643_v19  ;;  %v645_v21 = vunpack.i.h.bf16 %v643_v19 }
 0x103   : > { %425 = vmatpush.msrb.mxu2 %v644_v20 }
 0x105   : > { %426 = vmatpush.msrb.mxu2 %v645_v21 }
 0x106   : > { %595 = vmatmul.msk.f32.vlgmr.msrb.gmra.mxu2 %vm225_vm5, %v594_v22 }
 0x108   : > { %v658_v25 = vpop.permute.xlu2 %657 }
 0x109   : > { %v659_v26 = vunpack.i.l.bf16 %v658_v25  ;;  %v660_v27 = vunpack.i.h.bf16 %v658_v25 }
 0x10b   : > { %393 = vmatpush.msrb.mxu1 %v659_v26 }
 0x10d   : > { %394 = vmatpush.msrb.mxu1 %v660_v27 }
 0x10e   : > { %593 = vmatmul.msk.f32.vlgmr.msrb.gmra.mxu1 %vm225_vm5, %v592_v28 }
 0x10f   : > { %v638_v29 = vpop.permute.xlu1 %637  ;;  %v633_v30 = vpop.permute.xlu0 %632 }
 0x110   : > { %v634_v31 = vunpack.i.l.bf16 %v633_v30  ;;  %v639_v32 = vunpack.i.l.bf16 %v638_v29  ;;  %v635_v33 = vunpack.i.h.bf16 %v633_v30  ;;  %v640_v34 = vunpack.i.h.bf16 %v638_v29 }
 0x112   : > { %243 = vmatpush.msra.mxu0 %v634_v31  ;;  %329 = vmatpush.msra.mxu3 %v639_v32 }
 0x114   : > { %244 = vmatpush.msra.mxu0 %v635_v33  ;;  %330 = vmatpush.msra.mxu3 %v640_v34 }
 0x115   : > { %589 = vmatmul.msk.f32.vlgmr.msra.gmra.mxu3 %vm225_vm5, %v588_v35  ;;  %584 = vmatmul.msk.f32.vlgmr.msra.gmra.mxu0 %vm225_vm5, %v583_v36 }
 0x117   : > { %v653_v37 = vpop.permute.xlu1 %652  ;;  %v648_v38 = vpop.permute.xlu0 %647 }
 0x118   : > { %v649_v39 = vunpack.i.l.bf16 %v648_v38  ;;  %v654_v40 = vunpack.i.l.bf16 %v653_v37  ;;  %v650_v41 = vunpack.i.h.bf16 %v648_v38  ;;  %v655_v42 = vunpack.i.h.bf16 %v653_v37 }
 0x119   : > { %v269_v49 = vpop.f32.mrf.mxu1 }
 0x11a   : > { %361 = vmatpush.msrb.mxu0 %v649_v39  ;;  %457 = vmatpush.msrb.mxu3 %v654_v40 }
 0x11c   : > { %362 = vmatpush.msrb.mxu0 %v650_v41  ;;  %458 = vmatpush.msrb.mxu3 %v655_v42 }
 0x11d   : > { %597 = vmatmul.msk.f32.vlgmr.msrb.gmra.mxu3 %vm225_vm5, %v596_v43  ;;  %591 = vmatmul.msk.f32.vlgmr.msrb.gmra.mxu0 %vm225_vm5, %v590_v44 }
 0x11f   : > { %v663_v45 = vpop.permute.xlu0 %662  ;;  %v500_v1 = vpop.permute.xlu1 %499 }
 0x120   : > { %v664_v46 = vunpack.i.l.bf16 %v663_v45  ;;  %v665_v47 = vunpack.i.h.bf16 %v663_v45 }
 0x122   : > { %489 = vmatpush.msra.mxu0 %v664_v46 }
 0x124   : > { %490 = vmatpush.msra.mxu0 %v665_v47 }
 0x125   : > { %599 = vmatmul.msk.f32.vlgmr.msra.gmra.mxu0 %vm225_vm5, %v598_v48 }
 0x181   : > { %v300_v52 = vpop.f32.mrf.mxu2 }
 0x189   : > { %v428_v59 = vpop.f32.mrf.mxu2 }
 0x18b   : > { %v396_v57 = vpop.f32.mrf.mxu1 }
 0x192   : > { %v246_v50 = vpop.f32.mrf.mxu0 }
 0x193   : > { %v270_v51 = vadd.f32 %v269_v49, %v246_v50 }
 0x195   : > { %v303_v53 = vadd.f32 %v300_v52, %v270_v51 }
 0x198   : > { %v332_v54 = vpop.f32.mrf.mxu3 }
 0x199   : > { %v335_v55 = vadd.f32 %v332_v54, %v303_v53 }
 0x19a   : > { %v364_v56 = vpop.f32.mrf.mxu0 }
 0x19b   : > { %v367_v58 = vadd.f32 %v364_v56, %v335_v55 }
 0x19d   : > { %v399_v60 = vadd.f32 %v396_v57, %v367_v58 }
 0x19f   : > { %v431_v61 = vadd.f32 %v428_v59, %v399_v60 }
 0x1a0   : > { %v460_v62 = vpop.f32.mrf.mxu3 }
 0x1a1   : > { %v463_v63 = vadd.f32 %v460_v62, %v431_v61 }
 0x1a2   : > { %v492_v0 = vpop.f32.mrf.mxu0 }
 0x1a3   : > { %v495_v2 = vadd.f32 %v492_v0, %v463_v63 }
 0x1a5   : > { %v502_v3 = vadd.f32 %v500_v1, %v495_v2 }
 0x1a7   : > { %v503_v4 = vmax.f32 %v502_v3, 0.0 }
 0x1a9   : > { %512 = vrot.lane.b32.xlu0 %v503_v4, %s690_s4  ;;  %517 = vrot.lane.b32.xlu1 %v503_v4, %s681_s22  ;;  %505 = vst.msk [vmem:[%s168_s30] sm:$0xff] %vm504_vm6, %v503_v4 }
 0x1aa   : > { %507 = vrot.lane.b32.xlu2 %v503_v4, %s683_s24 }
 0x204   : > { %v508_v5 = vpop.permute.xlu2 %507 }
 0x205   : > { %511 = vst.msk [vmem:[%s168_s30] sm:$0xff] %vm510_vm7, %v508_v5 }
 0x21b   : > { %v513_v6 = vpop.permute.xlu0 %512  ;;  %v518_v7 = vpop.permute.xlu1 %517 }
 0x21c   : > { %516 = vst.msk [vmem:[%s168_s30] sm:$0xff] %vm515_vm8, %v513_v6 }
 0x21d   : > { %521 = vst.msk [vmem:[%s168_s30] sm:$0xff] %vm520_vm9, %v518_v7 }
 0x21e PF: > { %s13_s12 = sadd.s32 1, %s674_s12  }
 0x21f   : > { %p10_p4 = scmp.ge.s32.totalorder %s13_s12, 4  }
 0x221   :  { %12 = sbr.rel (!%p10_p4) target bundleno = 1 (0x1), region = 70 }

</bundles_post_ra>
